<compile_context>
chip_gen: v6e
topology: v6e:2x2x1
jax: 0.10.0
libtpu: 0.0.40
codegen_flags: <defaults>
</compile_context>

<pallas_src>
import functools

import jax
import jax.numpy as jnp
import numpy as np
from jax.experimental import pallas as pl
from jax.experimental.pallas import tpu as pltpu

LANE = 128
# Graphs whose padded node count is <= this use the fused single-pass kernel
# (A_hat resident in VMEM across both layers).  2048^2 bf16 = 8 MiB: fits every
# generation's VMEM (v7x: 64 MiB physical / 32 MiB default scoped) with room.
FUSED_MAX_NODES_PAD = 2048
# Two-pass (large graph) tiling: 512-row tiles, 1024-wide reduction tiles.
TWO_PASS_TM = 512
TWO_PASS_TK = 1024


def _round_up(x, m):
    return ((x + m - 1) // m) * m


def _vmem_limit(bytes_needed):
    # Leave pipelining/compiler headroom; cap below v7x's 64 MiB physical VMEM
    # (v5e/v6e have 128 MiB and could go higher if ever needed).
    return int(min(max(int(bytes_needed) + (8 << 20), 32 << 20), 48 << 20))


def padded_num_nodes(n):
    """Padded node count: lane-aligned for the fused path, tile-aligned (and an
    even number of 512-row tiles, good for v7x's two TensorCores) otherwise."""
    n128 = _round_up(n, LANE)
    if n128 <= FUSED_MAX_NODES_PAD:
        return n128
    return _round_up(n, TWO_PASS_TK)


# ----------------------- Fused single-pass kernel ---------------------------
def gcn_fused_kernel(adj_ref, x_ref, w1_ref, b1_ref, w2_ref, b2_ref, o_ref):
    """Both GCN layers with A_hat resident in VMEM (read from HBM once)."""
    # Layer 1: H = relu((A_hat @ X) @ W1 + b1)   (== A_hat @ (X @ W1) by assoc.)
    agg1 = jnp.dot(adj_ref[...], x_ref[...], preferred_element_type=jnp.float32)
    h = jnp.dot(agg1.astype(jnp.bfloat16), w1_ref[...],
                preferred_element_type=jnp.float32)
    h = jnp.maximum(h + b1_ref[...], 0.0).astype(jnp.bfloat16)
    # Dropout: identity (eval mode).
    # Layer 2: Y = (A_hat @ H) @ W2 + b2 ; A_hat reused from VMEM, h never hits HBM.
    agg2 = jnp.dot(adj_ref[...], h, preferred_element_type=jnp.float32)
    y = jnp.dot(agg2.astype(jnp.bfloat16), w2_ref[...],
                preferred_element_type=jnp.float32)
    o_ref[...] = (y + b2_ref[...]).astype(o_ref.dtype)


def gcn_fused(adj_p, x_p, w1_p, b1_p, w2_p, b2_p):
    n_pad = adj_p.shape[0]
    c_in = x_p.shape[1]
    c_hid = w1_p.shape[1]
    c_out = w2_p.shape[1]

    vmem_spec = pl.BlockSpec(memory_space=pltpu.MemorySpace.VMEM)
    flops = (2 * n_pad * n_pad * (c_in + c_hid)
             + 2 * n_pad * c_in * c_hid + 2 * n_pad * c_hid * c_out)
    bytes_accessed = (adj_p.size * 2 + x_p.size * 2
                      + w1_p.size * 2 + w2_p.size * 2
                      + b1_p.size * 4 + b2_p.size * 4 + n_pad * c_out * 4)
    vmem_needed = (adj_p.size * 2 + x_p.size * 2          # resident A_hat and X
                   + 2 * n_pad * c_hid * 2                # h / agg intermediates
                   + 2 * n_pad * c_out * 4                # f32 agg + output
                   + (w1_p.size + w2_p.size) * 2 + (b1_p.size + b2_p.size) * 4)

    return pl.pallas_call(
        gcn_fused_kernel,
        out_shape=jax.ShapeDtypeStruct((n_pad, c_out), jnp.float32),
        in_specs=[vmem_spec] * 6,
        out_specs=vmem_spec,
        compiler_params=pltpu.CompilerParams(
            vmem_limit_bytes=_vmem_limit(vmem_needed)),
        cost_estimate=pl.CostEstimate(flops=int(flops), transcendentals=0,
                                      bytes_accessed=int(bytes_accessed)),
    )(adj_p, x_p, w1_p, b1_p, w2_p, b2_p)


# --------------------- Two-pass tiled kernel (large N) ----------------------
def gcn_layer_kernel(adj_ref, z_ref, w_ref, b_ref, o_ref, acc_ref, *, tk, apply_relu):
    """One GCN layer for one row tile: O = maybe_relu((A_hat @ Z) @ W + b).

    Grid = (row_tiles, k_tiles); k reduces over adjacency columns.  Z is
    resident in VMEM (fetched once for the whole grid) and sliced per k step.
    acc_ref holds (A_hat @ Z) in f32; the small feature transform runs once per
    row tile in the finalize step.
    """
    k = pl.program_id(1)

    @pl.when(k == 0)
    def _init():
        acc_ref[...] = jnp.zeros_like(acc_ref)

    # Aggregation matmul on the MXU: bf16 inputs, f32 accumulation.
    k_off = pl.multiple_of(k * tk, tk)
    acc_ref[...] += jnp.dot(adj_ref[...], z_ref[pl.ds(k_off, tk), :],
                            preferred_element_type=jnp.float32)

    @pl.when(k == pl.num_programs(1) - 1)
    def _finalize():
        agg = acc_ref[...].astype(w_ref.dtype)        # bf16 into the MXU
        y = jnp.dot(agg, w_ref[...], preferred_element_type=jnp.float32)
        y = y + b_ref[...]                            # bias / ReLU in f32 (v5e-safe)
        if apply_relu:
            y = jnp.maximum(y, 0.0)
        o_ref[...] = y.astype(o_ref.dtype)


def gcn_layer(adj, z, w, b, *, tm, tk, apply_relu, out_dtype):
    """pallas_call wrapper for one GCN layer on padded, lane-aligned operands."""
    n_pad = adj.shape[0]
    c_in = z.shape[1]
    c_out = w.shape[1]
    grid = (n_pad // tm, n_pad // tk)

    flops = 2 * n_pad * n_pad * c_in + 2 * n_pad * c_in * c_out
    bytes_accessed = (adj.size * adj.dtype.itemsize
                      + z.size * z.dtype.itemsize           # resident: read once
                      + w.size * w.dtype.itemsize
                      + b.size * b.dtype.itemsize
                      + n_pad * c_out * jnp.dtype(out_dtype).itemsize)
    vmem_needed = (2 * tm * tk * adj.dtype.itemsize         # double-buffered A tiles
                   + 2 * z.size * z.dtype.itemsize          # resident features
                   + 2 * tm * c_out * jnp.dtype(out_dtype).itemsize
                   + tm * c_in * 4                          # f32 accumulator
                   + 2 * (w.size * w.dtype.itemsize + b.size * 4))

    return pl.pallas_call(
        functools.partial(gcn_layer_kernel, tk=tk, apply_relu=apply_relu),
        out_shape=jax.ShapeDtypeStruct((n_pad, c_out), out_dtype),
        grid_spec=pltpu.PrefetchScalarGridSpec(
            num_scalar_prefetch=0,
            grid=grid,
            in_specs=[
                pl.BlockSpec((tm, tk), lambda i, k: (i, k)),       # adjacency tile
                pl.BlockSpec((n_pad, c_in), lambda i, k: (0, 0)),  # resident features
                pl.BlockSpec((c_in, c_out), lambda i, k: (0, 0)),  # resident weight
                pl.BlockSpec((1, c_out), lambda i, k: (0, 0)),     # resident bias
            ],
            out_specs=pl.BlockSpec((tm, c_out), lambda i, k: (i, 0)),
            scratch_shapes=[pltpu.VMEM((tm, c_in), jnp.float32)],  # f32 accumulator
        ),
        compiler_params=pltpu.CompilerParams(
            dimension_semantics=("parallel", "arbitrary"),
            vmem_limit_bytes=_vmem_limit(vmem_needed)),
        cost_estimate=pl.CostEstimate(flops=int(flops), transcendentals=0,
                                      bytes_accessed=int(bytes_accessed)),
    )(adj, z, w, b)


# ------------------------------- Forward -------------------------------------
def _gcn_forward(adj_p, x_p, w1_p, b1_p, w2_p, b2_p, num_nodes, out_channels):
    """Full 2-layer GCN forward on pre-padded operands."""
    n_pad = adj_p.shape[0]
    if n_pad <= FUSED_MAX_NODES_PAD:
        y = gcn_fused(adj_p, x_p, w1_p, b1_p, w2_p, b2_p)
    else:
        # Layer 1: H = relu(A_hat @ X @ W1 + b1), kept bf16 for layer 2's MXU.
        h = gcn_layer(adj_p, x_p, w1_p, b1_p, tm=TWO_PASS_TM, tk=TWO_PASS_TK,
                      apply_relu=True, out_dtype=jnp.bfloat16)
        # Dropout: identity (eval mode).
        y = gcn_layer(adj_p, h, w2_p, b2_p, tm=TWO_PASS_TM, tk=TWO_PASS_TK,
                      apply_relu=False, out_dtype=jnp.float32)
    return y[:num_nodes, :out_channels]


gcn_forward = jax.jit(_gcn_forward, static_argnums=(6, 7))


# --------------------- One-time (per graph) preparation ----------------------
def build_normalized_adjacency_padded(edge_index, num_nodes, n_pad):
    """Dense D^{-1/2}(A+I)D^{-1/2}, built directly at padded size in bf16.

    Hoisted out of the forward pass (no per-forward pad/cast round trip).
    Duplicate edges sum (scatter-add); self-loops are a single weight-1 loop.
    TODO(synk): torch_geometric's add_remaining_self_loops keeps existing
    self-loop weights; graphs with explicit self-loops diverge slightly.
    """
    src, dst = edge_index[0], edge_index[1]
    not_loop = (src != dst).astype(jnp.float32)
    adj = jnp.zeros((n_pad, n_pad), jnp.float32)
    adj = adj.at[dst, src].add(not_loop)       # row = dst aggregates over col = src
    idx = jnp.arange(num_nodes)
    adj = adj.at[idx, idx].add(1.0)            # weight-1 self loops (real nodes only)
    deg = jnp.sum(adj, axis=1)
    dinv_sqrt = jnp.where(deg > 0, jax.lax.rsqrt(deg), 0.0)
    adj = dinv_sqrt[:, None] * adj * dinv_sqrt[None, :]
    return adj.astype(jnp.bfloat16)


def pad_features(x, n_pad):
    n, c_in = x.shape
    c_in_p = _round_up(c_in, LANE)
    return jnp.zeros((n_pad, c_in_p), jnp.bfloat16).at[:n, :c_in].set(
        x.astype(jnp.bfloat16))


def pad_params(w1, b1, w2, b2):
    c_in, c_hid = w1.shape
    c_out = w2.shape[1]
    c_in_p = _round_up(c_in, LANE)
    c_hid_p = _round_up(c_hid, LANE)
    c_out_p = _round_up(c_out, LANE)
    w1_p = jnp.zeros((c_in_p, c_hid_p), jnp.bfloat16).at[:c_in, :c_hid].set(
        w1.astype(jnp.bfloat16))
    b1_p = jnp.zeros((1, c_hid_p), jnp.float32).at[:, :c_hid].set(b1)
    w2_p = jnp.zeros((c_hid_p, c_out_p), jnp.bfloat16).at[:c_hid, :c_out].set(
        w2.astype(jnp.bfloat16))
    b2_p = jnp.zeros((1, c_out_p), jnp.float32).at[:, :c_out].set(b2)
    return w1_p, b1_p, w2_p, b2_p


def init_params(key, in_channels, hidden_channels, out_channels):
    """Deterministic glorot-uniform weights, zero biases (GCNConv defaults)."""
    k1, k2 = jax.random.split(key)

    def glorot(k, fan_in, fan_out):
        limit = np.sqrt(6.0 / (fan_in + fan_out))
        return jax.random.uniform(k, (fan_in, fan_out), jnp.float32, -limit, limit)

    w1 = glorot(k1, in_channels, hidden_channels)
    b1 = jnp.zeros((1, hidden_channels), jnp.float32)
    w2 = glorot(k2, hidden_channels, out_channels)
    b2 = jnp.zeros((1, out_channels), jnp.float32)
    return w1, b1, w2, b2


def reference_forward(adj_p, x_p, w1_p, b1_p, w2_p, b2_p, num_nodes, out_channels):
    """Pure-JAX reference on the same (bf16-quantized) padded inputs, in f32."""
    a = adj_p.astype(jnp.float32)
    x = x_p.astype(jnp.float32)
    h = jnp.maximum(a @ (x @ w1_p.astype(jnp.float32)) + b1_p, 0.0)
    y = a @ (h @ w2_p.astype(jnp.float32)) + b2_p
    return y[:num_nodes, :out_channels]


# --------------------------------- main --------------------------------------
if __name__ == "__main__":
    in_channels, hidden_channels, out_channels = 8, 32, 4

    def run_case(case_key, num_nodes, num_edges):
        k_x, k_e, k_p = jax.random.split(case_key, 3)
        x = jax.random.normal(k_x, (num_nodes, in_channels), jnp.float32)
        edge_index = jax.random.randint(k_e, (2, num_edges), 0, num_nodes, jnp.int32)
        w1, b1, w2, b2 = init_params(k_p, in_channels, hidden_channels, out_channels)

        # One-time padded/cast inputs -- hoisted out of the forward pass.
        n_pad = padded_num_nodes(num_nodes)
        adj_p = build_normalized_adjacency_padded(edge_index, num_nodes, n_pad)
        x_p = pad_features(x, n_pad)
        w1_p, b1_p, w2_p, b2_p = pad_params(w1, b1, w2, b2)

        out = gcn_forward(adj_p, x_p, w1_p, b1_p, w2_p, b2_p,
                          num_nodes, out_channels)
        out = jax.block_until_ready(out)

        ref = reference_forward(adj_p, x_p, w1_p, b1_p, w2_p, b2_p,
                                num_nodes, out_channels)
        # bf16 MXU inputs / intermediates (f32 accumulation) -> loose tolerance.
        np.testing.assert_allclose(np.asarray(out), np.asarray(ref),
                                   rtol=5e-2, atol=5e-2)

    key = jax.random.PRNGKey(0)
    k_small, k_large = jax.random.split(key)

    # Small graph -> fused single-pass kernel (A_hat resident in VMEM, n_pad=128).
    run_case(k_small, num_nodes=16, num_edges=40)
    # Larger graph -> two-pass tiled kernel (resident features, k-reduction,
    # grid=(6, 3) with tm=512, tk=1024).
    run_case(k_large, num_nodes=3000, num_edges=12000)

    print("KERNEL_OK")
</pallas_src>

<mosaic_0001>
module attributes {stable_mosaic.version = 11 : i64} {
  func.func @gcn_fused_kernel(%arg0: memref<128x128xbf16, #tpu.memory_space<vmem>>, %arg1: memref<128x128xbf16, #tpu.memory_space<vmem>>, %arg2: memref<128x128xbf16, #tpu.memory_space<vmem>>, %arg3: memref<1x128xf32, #tpu.memory_space<vmem>>, %arg4: memref<128x128xbf16, #tpu.memory_space<vmem>>, %arg5: memref<1x128xf32, #tpu.memory_space<vmem>>, %arg6: memref<128x128xf32, #tpu.memory_space<vmem>>) attributes {dimension_semantics = [], scalar_prefetch = 0 : i64, scratch_operands = 0 : i64, tpu.core_type = #tpu.core_type<tc>} {
    %c0 = arith.constant 0 : index
    %c0_0 = arith.constant 0 : index
    %0 = vector.load %arg0[%c0, %c0_0] : memref<128x128xbf16, #tpu.memory_space<vmem>>, vector<128x128xbf16>
    %c0_1 = arith.constant 0 : index
    %c0_2 = arith.constant 0 : index
    %1 = vector.load %arg1[%c0_1, %c0_2] : memref<128x128xbf16, #tpu.memory_space<vmem>>, vector<128x128xbf16>
    %cst = arith.constant dense<0.000000e+00> : vector<128x128xf32>
    %2 = tpu.matmul %0, %1, %cst {dimension_numbers = #tpu.dot_dimension_numbers<[1], [0], [0], [1], [0, 0, 1, 1], [], []>} : vector<128x128xbf16>, vector<128x128xbf16>, vector<128x128xf32> -> vector<128x128xf32>
    %3 = arith.truncf %2 : vector<128x128xf32> to vector<128x128xbf16>
    %c0_3 = arith.constant 0 : index
    %c0_4 = arith.constant 0 : index
    %4 = vector.load %arg2[%c0_3, %c0_4] : memref<128x128xbf16, #tpu.memory_space<vmem>>, vector<128x128xbf16>
    %cst_5 = arith.constant dense<0.000000e+00> : vector<128x128xf32>
    %5 = tpu.matmul %3, %4, %cst_5 {dimension_numbers = #tpu.dot_dimension_numbers<[1], [0], [0], [1], [0, 0, 1, 1], [], []>} : vector<128x128xbf16>, vector<128x128xbf16>, vector<128x128xf32> -> vector<128x128xf32>
    %c0_6 = arith.constant 0 : index
    %c0_7 = arith.constant 0 : index
    %6 = vector.load %arg3[%c0_6, %c0_7] : memref<1x128xf32, #tpu.memory_space<vmem>>, vector<1x128xf32>
    %7 = vector.broadcast %6 : vector<1x128xf32> to vector<128x128xf32>
    %8 = arith.addf %5, %7 : vector<128x128xf32>
    %cst_8 = arith.constant 0.000000e+00 : f32
    %9 = vector.broadcast %cst_8 : f32 to vector<128x128xf32>
    %10 = arith.maximumf %8, %9 : vector<128x128xf32>
    %11 = arith.truncf %10 : vector<128x128xf32> to vector<128x128xbf16>
    %c0_9 = arith.constant 0 : index
    %c0_10 = arith.constant 0 : index
    %12 = vector.load %arg0[%c0_9, %c0_10] : memref<128x128xbf16, #tpu.memory_space<vmem>>, vector<128x128xbf16>
    %cst_11 = arith.constant dense<0.000000e+00> : vector<128x128xf32>
    %13 = tpu.matmul %12, %11, %cst_11 {dimension_numbers = #tpu.dot_dimension_numbers<[1], [0], [0], [1], [0, 0, 1, 1], [], []>} : vector<128x128xbf16>, vector<128x128xbf16>, vector<128x128xf32> -> vector<128x128xf32>
    %14 = arith.truncf %13 : vector<128x128xf32> to vector<128x128xbf16>
    %c0_12 = arith.constant 0 : index
    %c0_13 = arith.constant 0 : index
    %15 = vector.load %arg4[%c0_12, %c0_13] : memref<128x128xbf16, #tpu.memory_space<vmem>>, vector<128x128xbf16>
    %cst_14 = arith.constant dense<0.000000e+00> : vector<128x128xf32>
    %16 = tpu.matmul %14, %15, %cst_14 {dimension_numbers = #tpu.dot_dimension_numbers<[1], [0], [0], [1], [0, 0, 1, 1], [], []>} : vector<128x128xbf16>, vector<128x128xbf16>, vector<128x128xf32> -> vector<128x128xf32>
    %c0_15 = arith.constant 0 : index
    %c0_16 = arith.constant 0 : index
    %17 = vector.load %arg5[%c0_15, %c0_16] : memref<1x128xf32, #tpu.memory_space<vmem>>, vector<1x128xf32>
    %18 = vector.broadcast %17 : vector<1x128xf32> to vector<128x128xf32>
    %19 = arith.addf %16, %18 : vector<128x128xf32>
    %c0_17 = arith.constant 0 : index
    %c0_18 = arith.constant 0 : index
    %20 = vector.load %arg6[%c0_17, %c0_18] : memref<128x128xf32, #tpu.memory_space<vmem>>, vector<128x128xf32>
    tpu.vector_store %arg6[%c0_17, %c0_18], %19 {strides = array<i32>} : memref<128x128xf32, #tpu.memory_space<vmem>>, vector<128x128xf32>,
    return
  }
}

</mosaic_0001>

<bundles_post_ra>
// kernel: _gcn_forward.1
= control target key start
LH: loop header
LB: loop body
LE: loop exit
PB: predicated region body
PF: predicated region fallthrough
CT: control target
= control target key end

     0   :  { %11 = vsyncpa [#allocation3], 0  ;;  %s1297_s0 = inlined_call_operand.hbm [shape: bf16[128,128], index: 0, kind: input, shape index: {}]   ;;  %s1298_s1 = inlined_call_operand.hbm [shape: bf16[128,128], index: 1, kind: input, shape index: {}]   ;;  %s1299_s2 = inlined_call_operand.hbm [shape: bf16[128,128], index: 2, kind: input, shape index: {}]   ;;  %s1300_s3 = inlined_call_operand.vmem [shape: f32[1,128], index: 3, kind: input, shape index: {}]   ;;  %s1301_s4 = inlined_call_operand.hbm [shape: bf16[128,128], index: 4, kind: input, shape index: {}]   ;;  %s1302_s5 = inlined_call_operand.vmem [shape: f32[1,128], index: 5, kind: input, shape index: {}]   ;;  %s1303_s6 = inlined_call_operand.vmem [shape: f32[128,128], index: 6, kind: output, shape index: {}]  }
   0x1   :  { %12 = vsyncpa [#allocation5], 0 }
   0x2   :  { %13 = vsyncpa [#allocation8], 0  ;;  %s1150_s21 = smov [#allocation4]   ;;  %s1151_s23 = smov [#allocation2]  }
   0x3   :  { %s31_s22 = sshll.u32 %s1150_s21, 4  ;;  %s19_s24 = sshll.u32 %s1151_s23, 4  ;;  %s32_s22 = int_to_ptr.vmem [resolvable:$true] %s31_s22  ;;  %s20_s24 = int_to_ptr.vmem [resolvable:$true] %s19_s24 }
   0x4   :  { %s1072_s25 = scalar_lea.vmem %s32_s22, 1024  ;;  %p1077_p1 = scmp.lt.s32.totalorder %s32_s22, %s32_s22 }
   0x5   :  { %p1073_p0 = scmp.ne.s32.totalorder %s32_s22, %s1072_s25  ;;  %p1078_p2 = scmp.lt.s32.totalorder %s1072_s25, %s1072_s25 }
   0x7   :  { %p1079_p3 = por %p1078_p2, %p1077_p1 }
   0x9   :  { %p1080_p4 = pnand %p1079_p3, %p1073_p0 }
   0xb   :  { %1083 = shalt.err (!%p1080_p4)
}
   0xc   :  { %s1152_s26 = smov 64   ;;  %s1153_s27 = smov 4  }
   0xd   :  { %37 = dma.hbm_to_vmem [thread:$0]  %s1298_s1, 1024, %s32_s22, [#allocation5], %s1152_s26, %s1152_s26, %s1153_s27  }
   0xe   :  { %s1092_s30 = scalar_lea.vmem %s20_s24, 1024  ;;  %p1097_p6 = scmp.lt.s32.totalorder %s20_s24, %s20_s24 }
   0xf   :  { %p1093_p5 = scmp.ne.s32.totalorder %s20_s24, %s1092_s30  ;;  %p1098_p7 = scmp.lt.s32.totalorder %s1092_s30, %s1092_s30 }
  0x11   :  { %p1099_p8 = por %p1098_p7, %p1097_p6 }
  0x13   :  { %p1100_p9 = pnand %p1099_p8, %p1093_p5 }
  0x15   :  { %1103 = shalt.err (!%p1100_p9)
}
  0x16   :  { %25 = dma.hbm_to_vmem [thread:$0]  %s1297_s0, 1024, %s20_s24, [#allocation3], %s1152_s26, %s1152_s26, %s1153_s27  }
  0x17   :  { %s1154_s9 = smov [#allocation6]   ;;  %s1155_s11 = smov [#allocation7]  }
  0x18   :  { %s43_s10 = sshll.u32 %s1154_s9, 4  ;;  %s57_s12 = sshll.u32 %s1155_s11, 4  ;;  %s44_s10 = int_to_ptr.vmem [resolvable:$true] %s43_s10  ;;  %s58_s12 = int_to_ptr.vmem [resolvable:$true] %s57_s12 }
  0x19   :  { %s1112_s1 = scalar_lea.vmem %s44_s10, 1024  ;;  %p1117_p11 = scmp.lt.s32.totalorder %s44_s10, %s44_s10 }
  0x1a   :  { %p1113_p10 = scmp.ne.s32.totalorder %s44_s10, %s1112_s1  ;;  %p1118_p12 = scmp.lt.s32.totalorder %s1112_s1, %s1112_s1 }
  0x1c   :  { %p1119_p13 = por %p1118_p12, %p1117_p11 }
  0x1e   :  { %p1120_p0 = pnand %p1119_p13, %p1113_p10 }
  0x20   :  { %1123 = shalt.err (!%p1120_p0)
}
  0x21   :  { %49 = dma.hbm_to_vmem [thread:$0]  %s1299_s2, 1024, %s44_s10, [#allocation5], %s1152_s26, %s1152_s26, %s1153_s27  }
  0x22   :  { %s1132_s0 = scalar_lea.vmem %s58_s12, 1024  ;;  %p1137_p2 = scmp.lt.s32.totalorder %s58_s12, %s58_s12 }
  0x23   :  { %p1133_p1 = scmp.ne.s32.totalorder %s58_s12, %s1132_s0  ;;  %p1138_p3 = scmp.lt.s32.totalorder %s1132_s0, %s1132_s0 }
  0x25   :  { %p1139_p4 = por %p1138_p3, %p1137_p2 }
  0x27   :  { %p1140_p5 = pnand %p1139_p4, %p1133_p1 }
  0x29   :  { %1143 = shalt.err (!%p1140_p5)
}
  0x2a   :  { %63 = dma.hbm_to_vmem [thread:$0]  %s1301_s4, 1024, %s58_s12, [#allocation8], %s1152_s26, %s1152_s26, %s1153_s27  }
  0x2b   :  { %1144 = dma.done.wait [#allocation3], 1024  }
  0x2c   :  { %1145 = vsyncadd [#allocation3], 4294966272 }
  0x2d   :  { %1146 = dma.done.wait [#allocation5], 2048  }
  0x2e   :  { %1147 = vsyncadd [#allocation5], 4294965248 }
  0x2f   :  { %1148 = dma.done.wait [#allocation8], 1024  }
  0x30   :  { %1149 = vsyncadd [#allocation8], 4294966272  ;;  %v1032_v0 = vld [vmem:[#allocation4 + $0x38] sm:$0xff]   ;;  %v1033_v1 = vld [vmem:[#allocation4 + $0x30] sm:$0xff]  }
  0x31   :  { %898 = vmatprep.subr.bf16.mxu0 %v1032_v0  ;;  %v1034_v2 = vld [vmem:[#allocation4 + $0x28] sm:$0xff]   ;;  %v1035_v3 = vld [vmem:[#allocation4 + $0x20] sm:$0xff]   ;;  %v1036_v5 = vld [vmem:[#allocation4 + $0x18] sm:$0xff]  }
  0x32   :  { %899 = vmatpush3.bf16.msra.mxu0 %v1032_v0  ;;  %v1040_v4 = vld [vmem:[#allocation2] sm:$0xff]   ;;  %v1037_v6 = vld [vmem:[#allocation4 + $0x10] sm:$0xff]   ;;  %v1048_v7 = vld [vmem:[#allocation6 + $0x38] sm:$0xff]  }
  0x33   :  { %900 = vmatprep.subr.bf16.mxu0 %v1033_v1  ;;  %914 = vmatprep.mubr.bf16.mxu0 %v1040_v4  ;;  %v1049_v8 = vld [vmem:[#allocation6 + $0x30] sm:$0xff]   ;;  %v1038_v9 = vld [vmem:[#allocation4 + $0x8] sm:$0xff]   ;;  %v1039_v11 = vld [vmem:[#allocation4] sm:$0xff]  }
  0x34   :  { %930 = vmatprep.subr.bf16.mxu1 %v1048_v7  ;;  %v1050_v10 = vld [vmem:[#allocation6 + $0x28] sm:$0xff]   ;;  %v1051_v12 = vld [vmem:[#allocation6 + $0x20] sm:$0xff]   ;;  %v1052_v13 = vld [vmem:[#allocation6 + $0x18] sm:$0xff]  }
  0x35   :  { %931 = vmatpush3.bf16.msra.mxu1 %v1048_v7  ;;  %v1215_v14 = vld [vmem:[#allocation2 + $0x8] sm:$0xff]   ;;  %v1217_v15 = vld [vmem:[#allocation2 + $0x10] sm:$0xff]   ;;  %v1221_v17 = vld [vmem:[#allocation2 + $0x18] sm:$0xff]  }
  0x36   :  { %901 = vmatpush3.bf16.msra.mxu0 %v1033_v1  ;;  %932 = vmatprep.subr.bf16.mxu1 %v1049_v8  ;;  %v1053_v16 = vld [vmem:[#allocation6 + $0x10] sm:$0xff]   ;;  %v1223_v18 = vld [vmem:[#allocation2 + $0x20] sm:$0xff]   ;;  %v1227_v19 = vld [vmem:[#allocation2 + $0x28] sm:$0xff]  }
  0x37   :  { %902 = vmatprep.subr.bf16.mxu0 %v1034_v2  ;;  %v1229_v20 = vld [vmem:[#allocation2 + $0x30] sm:$0xff]   ;;  %v1233_v21 = vld [vmem:[#allocation2 + $0x38] sm:$0xff]   ;;  %v1054_v22 = vld [vmem:[#allocation6 + $0x8] sm:$0xff]  }
  0x38   :  { %v1055_v23 = vld [vmem:[#allocation6] sm:$0xff]   ;;  %v1056_v48 = vld [vmem:[#allocation7 + $0x38] sm:$0xff]   ;;  %v1057_v49 = vld [vmem:[#allocation7 + $0x30] sm:$0xff]  }
  0x39   :  { %933 = vmatpush3.bf16.msra.mxu1 %v1049_v8  ;;  %v1058_v50 = vld [vmem:[#allocation7 + $0x28] sm:$0xff]   ;;  %v1059_v51 = vld [vmem:[#allocation7 + $0x20] sm:$0xff]   ;;  %v1060_v52 = vld [vmem:[#allocation7 + $0x18] sm:$0xff]  }
  0x3a   :  { %903 = vmatpush3.bf16.msra.mxu0 %v1034_v2  ;;  %934 = vmatprep.subr.bf16.mxu1 %v1050_v10  ;;  %v1061_v53 = vld [vmem:[#allocation7 + $0x10] sm:$0xff]  }
  0x3b   :  { %904 = vmatprep.subr.bf16.mxu0 %v1035_v3 }
  0x3d   :  { %935 = vmatpush3.bf16.msra.mxu1 %v1050_v10 }
  0x3e   :  { %905 = vmatpush3.bf16.msra.mxu0 %v1035_v3  ;;  %936 = vmatprep.subr.bf16.mxu1 %v1051_v12  ;;  %v816_v3 = vld [vmem:[%s1300_s3] ss:$0 sm:$0xff] }
  0x3f   :  { %906 = vmatprep.subr.bf16.mxu0 %v1036_v5 }
  0x41   :  { %937 = vmatpush3.bf16.msra.mxu1 %v1051_v12 }
  0x42   :  { %907 = vmatpush3.bf16.msra.mxu0 %v1036_v5  ;;  %938 = vmatprep.subr.bf16.mxu1 %v1052_v13 }
  0x43   :  { %908 = vmatprep.subr.bf16.mxu0 %v1037_v6 }
  0x45   :  { %939 = vmatpush3.bf16.msra.mxu1 %v1052_v13 }
  0x46   :  { %909 = vmatpush3.bf16.msra.mxu0 %v1037_v6  ;;  %940 = vmatprep.subr.bf16.mxu1 %v1053_v16 }
  0x47   :  { %910 = vmatprep.subr.bf16.mxu0 %v1038_v9 }
  0x49   :  { %941 = vmatpush3.bf16.msra.mxu1 %v1053_v16 }
  0x4a   :  { %911 = vmatpush3.bf16.msra.mxu0 %v1038_v9  ;;  %942 = vmatprep.subr.bf16.mxu1 %v1054_v22 }
  0x4b   :  { %912 = vmatprep.subr.bf16.mxu0 %v1039_v11 }
  0x4d   :  { %943 = vmatpush3.bf16.msra.mxu1 %v1054_v22 }
  0x4e   :  { %913 = vmatpush3.bf16.msra.mxu0 %v1039_v11  ;;  %944 = vmatprep.subr.bf16.mxu1 %v1055_v23 }
  0x51   :  { %915 = vmatmul.mubr.bf16.vlgmr.msra.gmra.mxu0 %v1215_v14  ;;  %945 = vmatpush3.bf16.msra.mxu1 %v1055_v23 }
  0x52   :  { %918 = vmatprep.mubr.bf16.mxu0 %v1217_v15  ;;  %994 = vmatprep.subr.bf16.mxu1 %v1056_v48 }
  0x59   :  { %919 = vmatmul.mubr.bf16.gmra.mxu0 %v1221_v17 }
  0x5a   :  { %922 = vmatprep.mubr.bf16.mxu0 %v1223_v18 }
  0x61   :  { %923 = vmatmul.mubr.bf16.gmra.mxu0 %v1227_v19 }
  0x62   :  { %926 = vmatprep.mubr.bf16.mxu0 %v1229_v20 }
  0x69   :  { %927 = vmatmul.mubr.bf16.gmra.mxu0 %v1233_v21 }
  0x6a   :  { %978 = vmatprep.mubr.bf16.mxu0 %v1040_v4 }
 0x111   :  { %v916_v24 = vpop.f32.mrf.mxu0 }
 0x113   :  { %v241_v25 = vpop.f32.mrf.mxu0 }
 0x115   :  { %v917_v26 = vpop.f32.mrf.mxu0 }
 0x116   :  { %v305_v29 = vpack.c.bf16 %v917_v26, %v916_v24 }
 0x117   :  { %v244_v27 = vpop.f32.mrf.mxu0 }
 0x118   :  { %v304_v28 = vpack.c.bf16 %v244_v27, %v241_v25 }
 0x119   :  { %v920_v30 = vpop.f32.mrf.mxu0 }
 0x11a   :  { %946 = vmatprep.mubr.bf16.mxu1 %v304_v28 }
 0x11b   :  { %v257_v31 = vpop.f32.mrf.mxu0  ;;  %947 = vmatmul.mubr.bf16.vlgmr.msra.gmra.mxu1 %v305_v29 }
 0x11c   :  { %995 = vmatpush3.bf16.msra.mxu1 %v1056_v48 }
 0x11d   :  { %v921_v32 = vpop.f32.mrf.mxu0  ;;  %996 = vmatprep.subr.bf16.mxu1 %v1057_v49 }
 0x11e   :  { %v307_v35 = vpack.c.bf16 %v921_v32, %v920_v30 }
 0x11f   :  { %v260_v33 = vpop.f32.mrf.mxu0 }
 0x120   :  { %v306_v34 = vpack.c.bf16 %v260_v33, %v257_v31  ;;  %997 = vmatpush3.bf16.msra.mxu1 %v1057_v49 }
 0x121   :  { %v924_v36 = vpop.f32.mrf.mxu0  ;;  %998 = vmatprep.subr.bf16.mxu1 %v1058_v50 }
 0x122   :  { %950 = vmatprep.mubr.bf16.mxu1 %v306_v34 }
 0x123   :  { %v273_v37 = vpop.f32.mrf.mxu0  ;;  %951 = vmatmul.mubr.bf16.gmra.mxu1 %v307_v35 }
 0x124   :  { %999 = vmatpush3.bf16.msra.mxu1 %v1058_v50 }
 0x125   :  { %v925_v38 = vpop.f32.mrf.mxu0  ;;  %1000 = vmatprep.subr.bf16.mxu1 %v1059_v51 }
 0x126   :  { %v309_v41 = vpack.c.bf16 %v925_v38, %v924_v36 }
 0x127   :  { %v276_v39 = vpop.f32.mrf.mxu0 }
 0x128   :  { %v308_v40 = vpack.c.bf16 %v276_v39, %v273_v37  ;;  %1001 = vmatpush3.bf16.msra.mxu1 %v1059_v51 }
 0x129   :  { %v928_v42 = vpop.f32.mrf.mxu0  ;;  %1002 = vmatprep.subr.bf16.mxu1 %v1060_v52 }
 0x12a   :  { %954 = vmatprep.mubr.bf16.mxu1 %v308_v40 }
 0x12b   :  { %v289_v43 = vpop.f32.mrf.mxu0  ;;  %955 = vmatmul.mubr.bf16.gmra.mxu1 %v309_v41 }
 0x12c   :  { %1003 = vmatpush3.bf16.msra.mxu1 %v1060_v52 }
 0x12d   :  { %v929_v44 = vpop.f32.mrf.mxu0  ;;  %1004 = vmatprep.subr.bf16.mxu1 %v1061_v53 }
 0x12e   :  { %v311_v47 = vpack.c.bf16 %v929_v44, %v928_v42 }
 0x12f   :  { %v292_v45 = vpop.f32.mrf.mxu0 }
 0x130   :  { %v310_v46 = vpack.c.bf16 %v292_v45, %v289_v43  ;;  %1005 = vmatpush3.bf16.msra.mxu1 %v1061_v53 }
 0x132   :  { %958 = vmatprep.mubr.bf16.mxu1 %v310_v46 }
 0x133   :  { %959 = vmatmul.mubr.bf16.gmra.mxu1 %v311_v47 }
 0x1db   :  { %v948_v54 = vpop.f32.mrf.mxu1 }
 0x1dc   :  { %v426_v43 = vadd.f32 %v948_v54, %v816_v3  ;;  %v1062_v54 = vld [vmem:[#allocation7 + $0x8] sm:$0xff]  }
 0x1dd   :  { %v417_v55 = vpop.f32.mrf.mxu1  ;;  %1006 = vmatprep.subr.bf16.mxu1 %v1062_v54 }
 0x1de   :  { %v482_v48 = vmax.f32 %v426_v43, 0.0  ;;  %v418_v49 = vadd.f32 %v816_v3, %v417_v55  ;;  %1007 = vmatpush3.bf16.msra.mxu1 %v1062_v54  ;;  %v1063_v55 = vld [vmem:[#allocation7] sm:$0xff]  }
 0x1df   :  { %v949_v56 = vpop.f32.mrf.mxu1  ;;  %1008 = vmatprep.subr.bf16.mxu1 %v1063_v55 }
 0x1e0   :  { %v429_v40 = vadd.f32 %v949_v56, %v816_v3  ;;  %v480_v52 = vmax.f32 %v418_v49, 0.0 }
 0x1e1   :  { %v420_v57 = vpop.f32.mrf.mxu1 }
 0x1e2   :  { %v483_v45 = vmax.f32 %v429_v40, 0.0  ;;  %v421_v46 = vadd.f32 %v816_v3, %v420_v57  ;;  %1009 = vmatpush3.bf16.msra.mxu1 %v1063_v55 }
 0x1e3   :  { %v952_v58 = vpop.f32.mrf.mxu1 }
 0x1e4   :  { %v442_v33 = vadd.f32 %v952_v58, %v816_v3  ;;  %v497_v50 = vpack.c.bf16 %v483_v45, %v482_v48  ;;  %v481_v51 = vmax.f32 %v421_v46, 0.0 }
 0x1e5   :  { %v433_v59 = vpop.f32.mrf.mxu1 }
 0x1e6   :  { %v486_v38 = vmax.f32 %v442_v33, 0.0  ;;  %v434_v39 = vadd.f32 %v816_v3, %v433_v59  ;;  %v496_v53 = vpack.c.bf16 %v481_v51, %v480_v52 }
 0x1e7   :  { %v953_v60 = vpop.f32.mrf.mxu1 }
 0x1e8   :  { %v445_v30 = vadd.f32 %v953_v60, %v816_v3  ;;  %v484_v44 = vmax.f32 %v434_v39, 0.0 }
 0x1e9   :  { %v436_v61 = vpop.f32.mrf.mxu1 }
 0x1ea   :  { %v487_v35 = vmax.f32 %v445_v30, 0.0  ;;  %v437_v36 = vadd.f32 %v816_v3, %v436_v61 }
 0x1eb   :  { %v956_v62 = vpop.f32.mrf.mxu1 }
 0x1ec   :  { %v458_v16 = vadd.f32 %v956_v62, %v816_v3  ;;  %v499_v41 = vpack.c.bf16 %v487_v35, %v486_v38  ;;  %v485_v42 = vmax.f32 %v437_v36, 0.0 }
 0x1ed   :  { %v449_v63 = vpop.f32.mrf.mxu1 }
 0x1ee   :  { %v490_v28 = vmax.f32 %v458_v16, 0.0  ;;  %v450_v29 = vadd.f32 %v816_v3, %v449_v63  ;;  %v498_v47 = vpack.c.bf16 %v485_v42, %v484_v44 }
 0x1ef   :  { %v957_v0 = vpop.f32.mrf.mxu1 }
 0x1f0   :  { %v461_v10 = vadd.f32 %v957_v0, %v816_v3  ;;  %v488_v34 = vmax.f32 %v450_v29, 0.0 }
 0x1f1   :  { %v452_v1 = vpop.f32.mrf.mxu1 }
 0x1f2   :  { %v491_v25 = vmax.f32 %v461_v10, 0.0  ;;  %v453_v26 = vadd.f32 %v816_v3, %v452_v1 }
 0x1f3   :  { %v960_v2 = vpop.f32.mrf.mxu1 }
 0x1f4   :  { %v474_v5 = vadd.f32 %v960_v2, %v816_v3  ;;  %v501_v31 = vpack.c.bf16 %v491_v25, %v490_v28  ;;  %v489_v32 = vmax.f32 %v453_v26, 0.0 }
 0x1f5   :  { %v465_v4 = vpop.f32.mrf.mxu1 }
 0x1f6   :  { %v466_v7 = vadd.f32 %v816_v3, %v465_v4  ;;  %v494_v11 = vmax.f32 %v474_v5, 0.0  ;;  %v500_v37 = vpack.c.bf16 %v489_v32, %v488_v34 }
 0x1f7   :  { %v961_v6 = vpop.f32.mrf.mxu1 }
 0x1f8   :  { %v477_v8 = vadd.f32 %v961_v6, %v816_v3  ;;  %v492_v22 = vmax.f32 %v466_v7, 0.0 }
 0x1f9   :  { %v468_v9 = vpop.f32.mrf.mxu1 }
 0x1fa   :  { %v495_v12 = vmax.f32 %v477_v8, 0.0  ;;  %v469_v13 = vadd.f32 %v816_v3, %v468_v9  ;;  %v825_v9 = vld [vmem:[%s1302_s5] ss:$0 sm:$0xff] }
 0x1fc   :  { %v503_v23 = vpack.c.bf16 %v495_v12, %v494_v11  ;;  %v493_v24 = vmax.f32 %v469_v13, 0.0 }
 0x1fe   :  { %v502_v27 = vpack.c.bf16 %v493_v24, %v492_v22  ;;  %962 = vmatprep.subr.bf16.mxu0 %v503_v23 }
 0x1ff   :  { %963 = vmatpush3.bf16.msra.mxu0 %v503_v23 }
 0x200   :  { %964 = vmatprep.subr.bf16.mxu0 %v502_v27 }
 0x203   :  { %965 = vmatpush3.bf16.msra.mxu0 %v502_v27 }
 0x204   :  { %966 = vmatprep.subr.bf16.mxu0 %v501_v31 }
 0x207   :  { %967 = vmatpush3.bf16.msra.mxu0 %v501_v31 }
 0x208   :  { %968 = vmatprep.subr.bf16.mxu0 %v500_v37 }
 0x20b   :  { %969 = vmatpush3.bf16.msra.mxu0 %v500_v37 }
 0x20c   :  { %970 = vmatprep.subr.bf16.mxu0 %v499_v41 }
 0x20f   :  { %971 = vmatpush3.bf16.msra.mxu0 %v499_v41 }
 0x210   :  { %972 = vmatprep.subr.bf16.mxu0 %v498_v47 }
 0x213   :  { %973 = vmatpush3.bf16.msra.mxu0 %v498_v47 }
 0x214   :  { %974 = vmatprep.subr.bf16.mxu0 %v497_v50 }
 0x217   :  { %975 = vmatpush3.bf16.msra.mxu0 %v497_v50 }
 0x218   :  { %976 = vmatprep.subr.bf16.mxu0 %v496_v53 }
 0x21b   :  { %977 = vmatpush3.bf16.msra.mxu0 %v496_v53 }
 0x21e   :  { %979 = vmatmul.mubr.bf16.vlgmr.msra.gmra.mxu0 %v1215_v14 }
 0x21f   :  { %982 = vmatprep.mubr.bf16.mxu0 %v1217_v15 }
 0x226   :  { %983 = vmatmul.mubr.bf16.gmra.mxu0 %v1221_v17 }
 0x227   :  { %986 = vmatprep.mubr.bf16.mxu0 %v1223_v18 }
 0x22e   :  { %987 = vmatmul.mubr.bf16.gmra.mxu0 %v1227_v19 }
 0x22f   :  { %990 = vmatprep.mubr.bf16.mxu0 %v1229_v20 }
 0x236   :  { %991 = vmatmul.mubr.bf16.gmra.mxu0 %v1233_v21 }
 0x2de   :  { %v980_v56 = vpop.f32.mrf.mxu0 }
 0x2e0   :  { %v538_v14 = vpop.f32.mrf.mxu0 }
 0x2e2   :  { %v981_v57 = vpop.f32.mrf.mxu0 }
 0x2e3   :  { %v602_v17 = vpack.c.bf16 %v981_v57, %v980_v56 }
 0x2e4   :  { %v541_v15 = vpop.f32.mrf.mxu0 }
 0x2e5   :  { %v601_v58 = vpack.c.bf16 %v541_v15, %v538_v14 }
 0x2e6   :  { %v984_v59 = vpop.f32.mrf.mxu0 }
 0x2e7   :  { %1010 = vmatprep.mubr.bf16.mxu1 %v601_v58 }
 0x2e8   :  { %v554_v18 = vpop.f32.mrf.mxu0  ;;  %1011 = vmatmul.mubr.bf16.vlgmr.msra.gmra.mxu1 %v602_v17 }
 0x2ea   :  { %v985_v19 = vpop.f32.mrf.mxu0 }
 0x2eb   :  { %v604_v21 = vpack.c.bf16 %v985_v19, %v984_v59 }
 0x2ec   :  { %v557_v20 = vpop.f32.mrf.mxu0 }
 0x2ed   :  { %v603_v60 = vpack.c.bf16 %v557_v20, %v554_v18 }
 0x2ee   :  { %v988_v61 = vpop.f32.mrf.mxu0 }
 0x2ef   :  { %1014 = vmatprep.mubr.bf16.mxu1 %v603_v60 }
 0x2f0   :  { %v570_v62 = vpop.f32.mrf.mxu0  ;;  %1015 = vmatmul.mubr.bf16.gmra.mxu1 %v604_v21 }
 0x2f2   :  { %v989_v63 = vpop.f32.mrf.mxu0 }
 0x2f3   :  { %v606_v2 = vpack.c.bf16 %v989_v63, %v988_v61 }
 0x2f4   :  { %v573_v0 = vpop.f32.mrf.mxu0 }
 0x2f5   :  { %v605_v1 = vpack.c.bf16 %v573_v0, %v570_v62 }
 0x2f6   :  { %v992_v3 = vpop.f32.mrf.mxu0 }
 0x2f7   :  { %1018 = vmatprep.mubr.bf16.mxu1 %v605_v1 }
 0x2f8   :  { %v586_v4 = vpop.f32.mrf.mxu0  ;;  %1019 = vmatmul.mubr.bf16.gmra.mxu1 %v606_v2 }
 0x2fa   :  { %v993_v5 = vpop.f32.mrf.mxu0 }
 0x2fb   :  { %v608_v8 = vpack.c.bf16 %v993_v5, %v992_v3 }
 0x2fc   :  { %v589_v6 = vpop.f32.mrf.mxu0 }
 0x2fd   :  { %v607_v7 = vpack.c.bf16 %v589_v6, %v586_v4 }
 0x2ff   :  { %1022 = vmatprep.mubr.bf16.mxu1 %v607_v7 }
 0x300   :  { %1023 = vmatmul.mubr.bf16.gmra.mxu1 %v608_v8 }
 0x3a8   :  { %v1012_v10 = vpop.f32.mrf.mxu1 }
 0x3a9   :  { %v723_v11 = vadd.f32 %v1012_v10, %v825_v9 }
 0x3aa   :  { %v714_v12 = vpop.f32.mrf.mxu1 }
 0x3ab   :  { %779 = vst [vmem:[%s1303_s6 + $0x10] sm:$0xff] %v723_v11  ;;  %v715_v13 = vadd.f32 %v825_v9, %v714_v12 }
 0x3ac   :  { %v1013_v16 = vpop.f32.mrf.mxu1 }
 0x3ad   :  { %777 = vst [vmem:[%s1303_s6] sm:$0xff] %v715_v13  ;;  %v726_v22 = vadd.f32 %v1013_v16, %v825_v9 }
 0x3ae   :  { %v717_v23 = vpop.f32.mrf.mxu1 }
 0x3af   :  { %780 = vst [vmem:[%s1303_s6 + $0x18] sm:$0xff] %v726_v22  ;;  %v718_v24 = vadd.f32 %v825_v9, %v717_v23 }
 0x3b0   :  { %v1016_v25 = vpop.f32.mrf.mxu1 }
 0x3b1   :  { %778 = vst [vmem:[%s1303_s6 + $0x8] sm:$0xff] %v718_v24  ;;  %v739_v26 = vadd.f32 %v1016_v25, %v825_v9 }
 0x3b2   :  { %v730_v27 = vpop.f32.mrf.mxu1 }
 0x3b3   :  { %783 = vst [vmem:[%s1303_s6 + $0x30] sm:$0xff] %v739_v26  ;;  %v731_v28 = vadd.f32 %v825_v9, %v730_v27 }
 0x3b4   :  { %v1017_v29 = vpop.f32.mrf.mxu1 }
 0x3b5   :  { %781 = vst [vmem:[%s1303_s6 + $0x20] sm:$0xff] %v731_v28  ;;  %v742_v30 = vadd.f32 %v1017_v29, %v825_v9 }
 0x3b6   :  { %v733_v31 = vpop.f32.mrf.mxu1 }
 0x3b7   :  { %784 = vst [vmem:[%s1303_s6 + $0x38] sm:$0xff] %v742_v30  ;;  %v734_v32 = vadd.f32 %v825_v9, %v733_v31 }
 0x3b8   :  { %v1020_v33 = vpop.f32.mrf.mxu1 }
 0x3b9   :  { %782 = vst [vmem:[%s1303_s6 + $0x28] sm:$0xff] %v734_v32  ;;  %v755_v34 = vadd.f32 %v1020_v33, %v825_v9 }
 0x3ba   :  { %v746_v35 = vpop.f32.mrf.mxu1 }
 0x3bb   :  { %787 = vst [vmem:[%s1303_s6 + $0x50] sm:$0xff] %v755_v34  ;;  %v747_v36 = vadd.f32 %v825_v9, %v746_v35 }
 0x3bc   :  { %v1021_v37 = vpop.f32.mrf.mxu1 }
 0x3bd   :  { %785 = vst [vmem:[%s1303_s6 + $0x40] sm:$0xff] %v747_v36  ;;  %v758_v38 = vadd.f32 %v1021_v37, %v825_v9 }
 0x3be   :  { %v749_v39 = vpop.f32.mrf.mxu1 }
 0x3bf   :  { %788 = vst [vmem:[%s1303_s6 + $0x58] sm:$0xff] %v758_v38  ;;  %v750_v40 = vadd.f32 %v825_v9, %v749_v39 }
 0x3c0   :  { %v1024_v41 = vpop.f32.mrf.mxu1 }
 0x3c1   :  { %786 = vst [vmem:[%s1303_s6 + $0x48] sm:$0xff] %v750_v40  ;;  %v771_v42 = vadd.f32 %v1024_v41, %v825_v9 }
 0x3c2   :  { %v762_v43 = vpop.f32.mrf.mxu1 }
 0x3c3   :  { %791 = vst [vmem:[%s1303_s6 + $0x70] sm:$0xff] %v771_v42  ;;  %v763_v44 = vadd.f32 %v825_v9, %v762_v43 }
 0x3c4   :  { %v1025_v45 = vpop.f32.mrf.mxu1 }
 0x3c5   :  { %789 = vst [vmem:[%s1303_s6 + $0x60] sm:$0xff] %v763_v44  ;;  %v774_v46 = vadd.f32 %v1025_v45, %v825_v9 }
 0x3c6   :  { %v765_v47 = vpop.f32.mrf.mxu1 }
 0x3c7   :  { %792 = vst [vmem:[%s1303_s6 + $0x78] sm:$0xff] %v774_v46  ;;  %v766_v48 = vadd.f32 %v825_v9, %v765_v47 }
 0x3c9   :  { %790 = vst [vmem:[%s1303_s6 + $0x68] sm:$0xff] %v766_v48 }
 0x3ca   :  { %797 = vsyncpa [#allocation3], 1 }
 0x3cb   :  { %798 = vsyncpa [#allocation5], 1 }
 0x3cc   :  { %799 = vsyncpa [#allocation8], 1 }

</bundles_post_ra>
